<compile_context>
chip_gen: v6e
topology: v6e:2x2x1
jax: 0.10.0
libtpu: 0.0.40
codegen_flags: <defaults>
</compile_context>

<pallas_src>
import jax
import jax.numpy as jnp
import numpy as np
from jax.experimental import pallas as pl
from jax.experimental.pallas import tpu as pltpu


def anfis_kernel(x_ref, a_ref, w_ref, zb_ref, clin_ref, cb_ref,
                 rs_ref, norm_ref, pred_ref):
    x = x_ref[...]          # (D, TN)      batch in lanes
    a_p = a_ref[...]        # (R_pad, D)   Gaussian centers (padded rows = 0)
    w_p = w_ref[...]        # (R_pad, D)   1/(2 b^2)        (padded rows = 0)
    clin = clin_ref[...]    # (R_pad, D)   linear coeffs    (padded rows = 0)
    zb = zb_ref[...]        # (R_pad, 1)   0 for real rules, -1e4 for padded
    cb = cb_ref[...]        # (R_pad, 1)   coeff bias       (padded rows = 0)
    d_dim = a_p.shape[1]

    # Unrolled over the (small) feature dimension: exact -(x-a)^2 * w form.
    zacc = None   # sum_d w_d * (x_d - a_d)^2        -> (R_pad, TN)
    racc = None   # sum_d c_d * x_d                  -> (R_pad, TN)
    for d in range(d_dim):
        xd = x[d:d + 1, :]                       # (1, TN)
        diff = xd - a_p[:, d:d + 1]              # (R_pad, TN)
        zt = w_p[:, d:d + 1] * (diff * diff)
        rt = clin[:, d:d + 1] * xd
        zacc = zt if zacc is None else zacc + zt
        racc = rt if racc is None else racc + rt

    z = zb - zacc                                # padded rules -> exp(-1e4) = 0
    rule_strengths = jnp.exp(z)                  # (R_pad, TN)

    strengths_sum = jnp.sum(rule_strengths, axis=0, keepdims=True)   # (1, TN)
    inv = pl.reciprocal(strengths_sum + 1e-8, approx=False)
    normalized = rule_strengths * inv                                # (R_pad, TN)

    rule_outputs = racc + cb                                         # (R_pad, TN)
    predictions = jnp.sum(normalized * rule_outputs, axis=0, keepdims=True)

    rs_ref[...] = rule_strengths
    norm_ref[...] = normalized
    pred_ref[...] = predictions


def anfis_forward(x, a, b, coeffs, *, tile_n=2048):
    """ANFIS forward pass.  Returns (predictions (N,), rule_strengths (N, R),
    normalized_strengths (N, R)) -- same semantics as the PyTorch module."""
    x = jnp.asarray(x, jnp.float32)
    a = jnp.asarray(a, jnp.float32)
    b = jnp.asarray(b, jnp.float32)
    coeffs = jnp.asarray(coeffs, jnp.float32)

    N, D = x.shape
    R = a.shape[0]

    # ---- parameter-only math, hoisted out of the kernel (runs once) ----------
    b_c = jnp.maximum(b, 1e-8)                   # torch.clamp(b, min=1e-8)
    w = 1.0 / (2.0 * b_c * b_c)                  # (R, D)
    c_lin = coeffs[:, :D]                        # (R, D)
    c_bias = coeffs[:, D]                        # (R,)

    # ---- pad the rule axis only to the 8-sublane boundary --------------------
    R_pad = max(8, ((R + 7) // 8) * 8)

    def pad_rules(m, fill=0.0):
        if m.shape[0] == R_pad:
            return m
        pad = jnp.full((R_pad - m.shape[0],) + m.shape[1:], fill, jnp.float32)
        return jnp.concatenate([m, pad], axis=0)

    a_p = pad_rules(a)                                            # (R_pad, D)
    w_p = pad_rules(w)                                            # (R_pad, D)
    clin_p = pad_rules(c_lin)                                     # (R_pad, D)
    cb_col = pad_rules(c_bias[:, None])                           # (R_pad, 1)
    zb_col = pad_rules(jnp.zeros((R, 1), jnp.float32), fill=-1e4)  # (R_pad, 1)

    # ---- batch lives in the lane axis: pad/tile to multiples of 128 ----------
    n128 = (max(N, 1) + 127) // 128
    max_tile_blocks = max(1, int(tile_n) // 128)
    # Keep >= 2 grid steps when the batch allows it so the "parallel" axis can
    # actually be split across TensorCores; cap the tile for VMEM headroom.
    tn_blocks = min(max_tile_blocks, n128 if n128 == 1 else max(1, n128 // 2))
    TN = tn_blocks * 128
    num_steps = (n128 + tn_blocks - 1) // tn_blocks
    N_pad = num_steps * TN

    x_t = x.T                                                     # (D, N)
    if N_pad != N:
        x_t = jnp.concatenate(
            [x_t, jnp.zeros((D, N_pad - N), jnp.float32)], axis=1)

    grid = (num_steps,)

    kernel = pl.pallas_call(
        anfis_kernel,
        grid=grid,
        in_specs=[
            pl.BlockSpec((D, TN), lambda i: (0, i)),        # x tile (batch in lanes)
            pl.BlockSpec((R_pad, D), lambda i: (0, 0)),     # a         (resident)
            pl.BlockSpec((R_pad, D), lambda i: (0, 0)),     # w         (resident)
            pl.BlockSpec((R_pad, 1), lambda i: (0, 0)),     # z bias    (resident)
            pl.BlockSpec((R_pad, D), lambda i: (0, 0)),     # c_lin     (resident)
            pl.BlockSpec((R_pad, 1), lambda i: (0, 0)),     # c_bias    (resident)
        ],
        out_specs=(
            pl.BlockSpec((R_pad, TN), lambda i: (0, i)),    # rule_strengths
            pl.BlockSpec((R_pad, TN), lambda i: (0, i)),    # normalized
            pl.BlockSpec((1, TN), lambda i: (0, i)),        # predictions (lane-dense)
        ),
        out_shape=(
            jax.ShapeDtypeStruct((R_pad, N_pad), jnp.float32),
            jax.ShapeDtypeStruct((R_pad, N_pad), jnp.float32),
            jax.ShapeDtypeStruct((1, N_pad), jnp.float32),
        ),
        compiler_params=pltpu.CompilerParams(
            dimension_semantics=("parallel",),
        ),
        cost_estimate=pl.CostEstimate(
            flops=int(N_pad * R_pad * (5 * D + 6)),
            transcendentals=int(N_pad * R_pad + N_pad),
            bytes_accessed=int(4 * (D * N_pad + 2 * R_pad * N_pad + N_pad
                                    + 4 * R_pad * D + 2 * R_pad)),
        ),
    )

    rs_pad, norm_pad, pred_pad = kernel(x_t, a_p, w_p, zb_col, clin_p, cb_col)

    # Slice off rule/batch padding and restore the (N, R) layout of the module.
    predictions = pred_pad[0, :N]
    rule_strengths = rs_pad[:R, :N].T
    normalized = norm_pad[:R, :N].T
    return predictions, rule_strengths, normalized


def anfis_reference(x, a, b, coeffs):
    """Pure-JAX transcription of the PyTorch forward (for correctness check)."""
    x = x.astype(jnp.float32)
    mu = jnp.exp(-(x[:, None, :] - a[None]) ** 2
                 / (2.0 * jnp.maximum(b, 1e-8)[None] ** 2))
    rs = jnp.prod(mu, axis=2)
    s = jnp.sum(rs, axis=1, keepdims=True)
    norm = rs / (s + 1e-8)
    x_aug = jnp.concatenate([x, jnp.ones((x.shape[0], 1), jnp.float32)], axis=1)
    ro = x_aug @ coeffs.T
    pred = jnp.sum(norm * ro, axis=1)
    return pred, rs, norm


if __name__ == "__main__":
    # Small, deterministic shapes consistent with the module; batch and rule
    # counts are deliberately non-multiples of the tile sizes so the padding
    # paths are exercised.
    N, input_dim, num_rules = 10, 4, 6

    key = jax.random.PRNGKey(0)
    k_x, k_a, k_b, k_c = jax.random.split(key, 4)

    x = jax.random.normal(k_x, (N, input_dim), dtype=jnp.float32)
    a = jax.random.normal(k_a, (num_rules, input_dim), dtype=jnp.float32)
    b = jnp.abs(jax.random.normal(k_b, (num_rules, input_dim), dtype=jnp.float32))
    # Module inits coeffs to zeros; use small random values so the linear path
    # is exercised non-trivially (still deterministic).
    coeffs = 0.1 * jax.random.normal(k_c, (num_rules, input_dim + 1),
                                     dtype=jnp.float32)

    pred, rs, norm = anfis_forward(x, a, b, coeffs)
    jax.block_until_ready((pred, rs, norm))

    pred_ref, rs_ref, norm_ref = anfis_reference(x, a, b, coeffs)

    np.testing.assert_allclose(np.asarray(rs), np.asarray(rs_ref),
                               rtol=1e-5, atol=1e-5)
    np.testing.assert_allclose(np.asarray(norm), np.asarray(norm_ref),
                               rtol=1e-5, atol=1e-5)
    np.testing.assert_allclose(np.asarray(pred), np.asarray(pred_ref),
                               rtol=1e-5, atol=1e-5)

    print("KERNEL_OK")
</pallas_src>

<mosaic_0001>
module attributes {stable_mosaic.version = 11 : i64} {
  func.func @anfis_kernel(%arg0: i32, %arg1: memref<4x128xf32, #tpu.memory_space<vmem>>, %arg2: memref<8x4xf32, #tpu.memory_space<vmem>>, %arg3: memref<8x4xf32, #tpu.memory_space<vmem>>, %arg4: memref<8x1xf32, #tpu.memory_space<vmem>>, %arg5: memref<8x4xf32, #tpu.memory_space<vmem>>, %arg6: memref<8x1xf32, #tpu.memory_space<vmem>>, %arg7: memref<8x128xf32, #tpu.memory_space<vmem>>, %arg8: memref<8x128xf32, #tpu.memory_space<vmem>>, %arg9: memref<1x128xf32, #tpu.memory_space<vmem>>) attributes {dimension_semantics = [#tpu.dimension_semantics<parallel>], iteration_bounds = array<i64: 1>, scalar_prefetch = 0 : i64, scratch_operands = 0 : i64, tpu.core_type = #tpu.core_type<tc>, window_params = [{transform_indices = @transform_0, window_bounds = array<i64: 4, 128>}, {pipeline_mode = #tpu.pipeline_mode<synchronous>, transform_indices = @transform_1, window_bounds = array<i64: 8, 4>}, {pipeline_mode = #tpu.pipeline_mode<synchronous>, transform_indices = @transform_2, window_bounds = array<i64: 8, 4>}, {pipeline_mode = #tpu.pipeline_mode<synchronous>, transform_indices = @transform_3, window_bounds = array<i64: 8, 1>}, {pipeline_mode = #tpu.pipeline_mode<synchronous>, transform_indices = @transform_4, window_bounds = array<i64: 8, 4>}, {pipeline_mode = #tpu.pipeline_mode<synchronous>, transform_indices = @transform_5, window_bounds = array<i64: 8, 1>}, {transform_indices = @transform_6, window_bounds = array<i64: 8, 128>}, {transform_indices = @transform_7, window_bounds = array<i64: 8, 128>}, {transform_indices = @transform_8, window_bounds = array<i64: 1, 128>}]} {
    %c0 = arith.constant 0 : index
    %c0_0 = arith.constant 0 : index
    %0 = vector.load %arg1[%c0, %c0_0] : memref<4x128xf32, #tpu.memory_space<vmem>>, vector<4x128xf32>
    %c0_1 = arith.constant 0 : index
    %c0_2 = arith.constant 0 : index
    %1 = vector.load %arg2[%c0_1, %c0_2] : memref<8x4xf32, #tpu.memory_space<vmem>>, vector<8x4xf32>
    %c0_3 = arith.constant 0 : index
    %c0_4 = arith.constant 0 : index
    %2 = vector.load %arg3[%c0_3, %c0_4] : memref<8x4xf32, #tpu.memory_space<vmem>>, vector<8x4xf32>
    %c0_5 = arith.constant 0 : index
    %c0_6 = arith.constant 0 : index
    %3 = vector.load %arg5[%c0_5, %c0_6] : memref<8x4xf32, #tpu.memory_space<vmem>>, vector<8x4xf32>
    %c0_7 = arith.constant 0 : index
    %c0_8 = arith.constant 0 : index
    %4 = vector.load %arg4[%c0_7, %c0_8] : memref<8x1xf32, #tpu.memory_space<vmem>>, vector<8x1xf32>
    %c0_9 = arith.constant 0 : index
    %c0_10 = arith.constant 0 : index
    %5 = vector.load %arg6[%c0_9, %c0_10] : memref<8x1xf32, #tpu.memory_space<vmem>>, vector<8x1xf32>
    %6 = vector.extract_strided_slice %0 {offsets = [0, 0], sizes = [1, 128], strides = [1, 1]} : vector<4x128xf32> to vector<1x128xf32>
    %7 = vector.extract_strided_slice %1 {offsets = [0, 0], sizes = [8, 1], strides = [1, 1]} : vector<8x4xf32> to vector<8x1xf32>
    %8 = vector.broadcast %6 : vector<1x128xf32> to vector<8x128xf32>
    %9 = vector.broadcast %7 : vector<8x1xf32> to vector<8x128xf32>
    %10 = arith.subf %8, %9 : vector<8x128xf32>
    %11 = vector.extract_strided_slice %2 {offsets = [0, 0], sizes = [8, 1], strides = [1, 1]} : vector<8x4xf32> to vector<8x1xf32>
    %12 = arith.mulf %10, %10 : vector<8x128xf32>
    %13 = vector.broadcast %11 : vector<8x1xf32> to vector<8x128xf32>
    %14 = arith.mulf %13, %12 : vector<8x128xf32>
    %15 = vector.extract_strided_slice %3 {offsets = [0, 0], sizes = [8, 1], strides = [1, 1]} : vector<8x4xf32> to vector<8x1xf32>
    %16 = vector.broadcast %15 : vector<8x1xf32> to vector<8x128xf32>
    %17 = vector.broadcast %6 : vector<1x128xf32> to vector<8x128xf32>
    %18 = arith.mulf %16, %17 : vector<8x128xf32>
    %19 = vector.extract_strided_slice %0 {offsets = [1, 0], sizes = [1, 128], strides = [1, 1]} : vector<4x128xf32> to vector<1x128xf32>
    %20 = vector.extract_strided_slice %1 {offsets = [0, 1], sizes = [8, 1], strides = [1, 1]} : vector<8x4xf32> to vector<8x1xf32>
    %21 = vector.broadcast %19 : vector<1x128xf32> to vector<8x128xf32>
    %22 = vector.broadcast %20 : vector<8x1xf32> to vector<8x128xf32>
    %23 = arith.subf %21, %22 : vector<8x128xf32>
    %24 = vector.extract_strided_slice %2 {offsets = [0, 1], sizes = [8, 1], strides = [1, 1]} : vector<8x4xf32> to vector<8x1xf32>
    %25 = arith.mulf %23, %23 : vector<8x128xf32>
    %26 = vector.broadcast %24 : vector<8x1xf32> to vector<8x128xf32>
    %27 = arith.mulf %26, %25 : vector<8x128xf32>
    %28 = vector.extract_strided_slice %3 {offsets = [0, 1], sizes = [8, 1], strides = [1, 1]} : vector<8x4xf32> to vector<8x1xf32>
    %29 = vector.broadcast %28 : vector<8x1xf32> to vector<8x128xf32>
    %30 = vector.broadcast %19 : vector<1x128xf32> to vector<8x128xf32>
    %31 = arith.mulf %29, %30 : vector<8x128xf32>
    %32 = arith.addf %14, %27 : vector<8x128xf32>
    %33 = arith.addf %18, %31 : vector<8x128xf32>
    %34 = vector.extract_strided_slice %0 {offsets = [2, 0], sizes = [1, 128], strides = [1, 1]} : vector<4x128xf32> to vector<1x128xf32>
    %35 = vector.extract_strided_slice %1 {offsets = [0, 2], sizes = [8, 1], strides = [1, 1]} : vector<8x4xf32> to vector<8x1xf32>
    %36 = vector.broadcast %34 : vector<1x128xf32> to vector<8x128xf32>
    %37 = vector.broadcast %35 : vector<8x1xf32> to vector<8x128xf32>
    %38 = arith.subf %36, %37 : vector<8x128xf32>
    %39 = vector.extract_strided_slice %2 {offsets = [0, 2], sizes = [8, 1], strides = [1, 1]} : vector<8x4xf32> to vector<8x1xf32>
    %40 = arith.mulf %38, %38 : vector<8x128xf32>
    %41 = vector.broadcast %39 : vector<8x1xf32> to vector<8x128xf32>
    %42 = arith.mulf %41, %40 : vector<8x128xf32>
    %43 = vector.extract_strided_slice %3 {offsets = [0, 2], sizes = [8, 1], strides = [1, 1]} : vector<8x4xf32> to vector<8x1xf32>
    %44 = vector.broadcast %43 : vector<8x1xf32> to vector<8x128xf32>
    %45 = vector.broadcast %34 : vector<1x128xf32> to vector<8x128xf32>
    %46 = arith.mulf %44, %45 : vector<8x128xf32>
    %47 = arith.addf %32, %42 : vector<8x128xf32>
    %48 = arith.addf %33, %46 : vector<8x128xf32>
    %49 = vector.extract_strided_slice %0 {offsets = [3, 0], sizes = [1, 128], strides = [1, 1]} : vector<4x128xf32> to vector<1x128xf32>
    %50 = vector.extract_strided_slice %1 {offsets = [0, 3], sizes = [8, 1], strides = [1, 1]} : vector<8x4xf32> to vector<8x1xf32>
    %51 = vector.broadcast %49 : vector<1x128xf32> to vector<8x128xf32>
    %52 = vector.broadcast %50 : vector<8x1xf32> to vector<8x128xf32>
    %53 = arith.subf %51, %52 : vector<8x128xf32>
    %54 = vector.extract_strided_slice %2 {offsets = [0, 3], sizes = [8, 1], strides = [1, 1]} : vector<8x4xf32> to vector<8x1xf32>
    %55 = arith.mulf %53, %53 : vector<8x128xf32>
    %56 = vector.broadcast %54 : vector<8x1xf32> to vector<8x128xf32>
    %57 = arith.mulf %56, %55 : vector<8x128xf32>
    %58 = vector.extract_strided_slice %3 {offsets = [0, 3], sizes = [8, 1], strides = [1, 1]} : vector<8x4xf32> to vector<8x1xf32>
    %59 = vector.broadcast %58 : vector<8x1xf32> to vector<8x128xf32>
    %60 = vector.broadcast %49 : vector<1x128xf32> to vector<8x128xf32>
    %61 = arith.mulf %59, %60 : vector<8x128xf32>
    %62 = arith.addf %47, %57 : vector<8x128xf32>
    %63 = arith.addf %48, %61 : vector<8x128xf32>
    %64 = vector.broadcast %4 : vector<8x1xf32> to vector<8x128xf32>
    %65 = arith.subf %64, %62 : vector<8x128xf32>
    %66 = math.exp %65 : vector<8x128xf32>
    %cst = arith.constant dense<0.000000e+00> : vector<128xf32>
    %67 = vector.multi_reduction <add>, %66, %cst [0] : vector<8x128xf32> to vector<128xf32>
    %68 = vector.shape_cast %67 : vector<128xf32> to vector<1x128xf32>
    %cst_11 = arith.constant 9.99999993E-9 : f32
    %69 = vector.broadcast %cst_11 : f32 to vector<1x128xf32>
    %70 = arith.addf %68, %69 : vector<1x128xf32>
    %71 = tpu.reciprocal %70 : vector<1x128xf32> -> vector<1x128xf32>
    %72 = vector.broadcast %71 : vector<1x128xf32> to vector<8x128xf32>
    %73 = arith.mulf %66, %72 : vector<8x128xf32>
    %74 = vector.broadcast %5 : vector<8x1xf32> to vector<8x128xf32>
    %75 = arith.addf %63, %74 : vector<8x128xf32>
    %76 = arith.mulf %73, %75 : vector<8x128xf32>
    %cst_12 = arith.constant dense<0.000000e+00> : vector<128xf32>
    %77 = vector.multi_reduction <add>, %76, %cst_12 [0] : vector<8x128xf32> to vector<128xf32>
    %78 = vector.shape_cast %77 : vector<128xf32> to vector<1x128xf32>
    %c0_13 = arith.constant 0 : index
    %c0_14 = arith.constant 0 : index
    %79 = vector.load %arg7[%c0_13, %c0_14] : memref<8x128xf32, #tpu.memory_space<vmem>>, vector<8x128xf32>
    tpu.vector_store %arg7[%c0_13, %c0_14], %66 {strides = array<i32>} : memref<8x128xf32, #tpu.memory_space<vmem>>, vector<8x128xf32>,
    %c0_15 = arith.constant 0 : index
    %c0_16 = arith.constant 0 : index
    %80 = vector.load %arg8[%c0_15, %c0_16] : memref<8x128xf32, #tpu.memory_space<vmem>>, vector<8x128xf32>
    tpu.vector_store %arg8[%c0_15, %c0_16], %73 {strides = array<i32>} : memref<8x128xf32, #tpu.memory_space<vmem>>, vector<8x128xf32>,
    %c0_17 = arith.constant 0 : index
    %c0_18 = arith.constant 0 : index
    %81 = vector.load %arg9[%c0_17, %c0_18] : memref<1x128xf32, #tpu.memory_space<vmem>>, vector<1x128xf32>
    tpu.vector_store %arg9[%c0_17, %c0_18], %78 {strides = array<i32>} : memref<1x128xf32, #tpu.memory_space<vmem>>, vector<1x128xf32>,
    return
  }
  func.func @transform_0(%arg0: i32) -> (i32, i32) {
    %c0_i32 = arith.constant 0 : i32
    %c0_i32_0 = arith.constant 0 : i32
    return %c0_i32, %arg0 : i32, i32
  }
  func.func @transform_1(%arg0: i32) -> (i32, i32) {
    %c0_i32 = arith.constant 0 : i32
    %c0_i32_0 = arith.constant 0 : i32
    %c0_i32_1 = arith.constant 0 : i32
    return %c0_i32, %c0_i32_0 : i32, i32
  }
  func.func @transform_2(%arg0: i32) -> (i32, i32) {
    %c0_i32 = arith.constant 0 : i32
    %c0_i32_0 = arith.constant 0 : i32
    %c0_i32_1 = arith.constant 0 : i32
    return %c0_i32, %c0_i32_0 : i32, i32
  }
  func.func @transform_3(%arg0: i32) -> (i32, i32) {
    %c0_i32 = arith.constant 0 : i32
    %c0_i32_0 = arith.constant 0 : i32
    %c0_i32_1 = arith.constant 0 : i32
    return %c0_i32, %c0_i32_0 : i32, i32
  }
  func.func @transform_4(%arg0: i32) -> (i32, i32) {
    %c0_i32 = arith.constant 0 : i32
    %c0_i32_0 = arith.constant 0 : i32
    %c0_i32_1 = arith.constant 0 : i32
    return %c0_i32, %c0_i32_0 : i32, i32
  }
  func.func @transform_5(%arg0: i32) -> (i32, i32) {
    %c0_i32 = arith.constant 0 : i32
    %c0_i32_0 = arith.constant 0 : i32
    %c0_i32_1 = arith.constant 0 : i32
    return %c0_i32, %c0_i32_0 : i32, i32
  }
  func.func @transform_6(%arg0: i32) -> (i32, i32) {
    %c0_i32 = arith.constant 0 : i32
    %c0_i32_0 = arith.constant 0 : i32
    return %c0_i32, %arg0 : i32, i32
  }
  func.func @transform_7(%arg0: i32) -> (i32, i32) {
    %c0_i32 = arith.constant 0 : i32
    %c0_i32_0 = arith.constant 0 : i32
    return %c0_i32, %arg0 : i32, i32
  }
  func.func @transform_8(%arg0: i32) -> (i32, i32) {
    %c0_i32 = arith.constant 0 : i32
    %c0_i32_0 = arith.constant 0 : i32
    return %c0_i32, %arg0 : i32, i32
  }
}

</mosaic_0001>

<bundles_post_ra>
// kernel: tpu_custom_call.1
= control target key start
LH: loop header
LB: loop body
LE: loop exit
PB: predicated region body
PF: predicated region fallthrough
CT: control target
= control target key end

     0   :  { %14 = vsyncpa [#allocation3], 0  ;;  %v287_v1 = vmov 2   ;;  %v288_v2 = vmov 0   ;;  %s366_s0 = inlined_call_operand.vmem [shape: f32[4,128], index: 0, kind: input, shape index: {}]   ;;  %s367_s1 = inlined_call_operand.vmem [shape: f32[8,4], index: 1, kind: input, shape index: {}]   ;;  %s368_s2 = inlined_call_operand.vmem [shape: f32[8,4], index: 2, kind: input, shape index: {}]   ;;  %s369_s3 = inlined_call_operand.vmem [shape: f32[8,1], index: 3, kind: input, shape index: {}]   ;;  %s370_s4 = inlined_call_operand.vmem [shape: f32[8,4], index: 4, kind: input, shape index: {}]   ;;  %s371_s5 = inlined_call_operand.vmem [shape: f32[8,1], index: 5, kind: input, shape index: {}]   ;;  %s372_s6 = inlined_call_operand.hbm [shape: f32[8,128], index: 6, kind: output, shape index: {0}]   ;;  %s373_s7 = inlined_call_operand.hbm [shape: f32[8,128], index: 7, kind: output, shape index: {1}]   ;;  %s374_s8 = inlined_call_operand.hbm [shape: f32[1,128], index: 8, kind: output, shape index: {2}]  }
   0x1   :  { %v29_v0 = vld [vmem:[%s367_s1] sm:$0xff]  ;;  %206 = vset.pattern.permute.xlu1 %v287_v1  ;;  %204 = vset.pattern.permute.xlu0 %v288_v2 }
   0x2   :  { %84 = vperm.xlu1 %206, %v29_v0   ;;  %40 = vperm.xlu0 %204, %v29_v0  }
   0x3   :  { %15 = vsyncpa [#allocation5], 0  ;;  %v30_v3 = vld [vmem:[%s368_s2] sm:$0xff]  ;;  %v289_v4 = vmov 1   ;;  %v290_v5 = vmov 3   ;;  %v34_v9 = vlaneseq }
   0x4   :  { %v32_v6 = vld [vmem:[%s369_s3] sm:$0xff] }
   0x5   :  { %v31_v7 = vld [vmem:[%s370_s4] sm:$0xff]  ;;  %v35_v10 = vshrl.u32 %v34_v9, 7 }
   0x6   :  { %207 = vset.pattern.permute.xlu1 %v288_v2  ;;  %205 = vset.pattern.permute.xlu0 %v289_v4  ;;  %v33_v8 = vld [vmem:[%s371_s5] sm:$0xff] }
   0x7   :  { %47 = vperm.xlu1 %207, %v30_v3   ;;  %62 = vperm.xlu0 %205, %v29_v0   ;;  %v59_v11 = vsub.s32 1, %v35_v10  ;;  %v36_v14 = vsub.s32 0, %v35_v10  ;;  %v28_v15 = vld [vmem:[%s366_s0] sm:$0xf]  ;;  %v81_v16 = vsub.s32 2, %v35_v10  ;;  %v103_v21 = vsub.s32 3, %v35_v10 }
   0x8   :  { %s291_s0 = smov [#allocation2]  }
   0x9   :  { %v60_v17 = vrot.slane %v28_v15, %v59_v11  ;;  %v37_v18 = vrot.slane %v28_v15, %v36_v14  ;;  %v82_v22 = vrot.slane %v28_v15, %v81_v16  ;;  %v104_v25 = vrot.slane %v28_v15, %v103_v21  ;;  %s162_s5 = sshll.u32 %s291_s0, 4  ;;  %s163_s5 = int_to_ptr.vmem [resolvable:$true] %s162_s5 }
   0xa   :  { %s223_s13 = scalar_lea.vmem %s163_s5, 128  ;;  %p228_p1 = scmp.lt.s32.totalorder %s163_s5, %s163_s5 }
   0xb   :  { %208 = vset.pattern.permute.xlu1 %v289_v4  ;;  %209 = vset.pattern.permute.xlu0 %v290_v5  ;;  %p224_p0 = scmp.ne.s32.totalorder %s163_s5, %s223_s13  ;;  %p229_p2 = scmp.lt.s32.totalorder %s223_s13, %s223_s13 }
   0xc   :  { %68 = vperm.xlu1 %208, %v30_v3   ;;  %106 = vperm.xlu0 %209, %v29_v0  }
   0xd   :  { %p230_p3 = por %p229_p2, %p228_p1 }
   0xf   :  { %p231_p4 = pnand %p230_p3, %p224_p0 }
  0x10   :  { %210 = vset.pattern.permute.xlu1 %v287_v1  ;;  %212 = vset.pattern.permute.xlu0 %v288_v2 }
  0x11   :  { %90 = vperm.xlu1 %210, %v30_v3   ;;  %125 = vperm.xlu0 %212, %v32_v6  }
  0x15   :  { %211 = vset.pattern.permute.xlu1 %v290_v5  ;;  %215 = vset.pattern.permute.xlu0 %v287_v1 }
  0x16   :  { %112 = vperm.xlu1 %211, %v30_v3   ;;  %95 = vperm.xlu0 %215, %v31_v7  }
  0x1a   :  { %213 = vset.pattern.permute.xlu1 %v288_v2  ;;  %218 = vset.pattern.permute.xlu0 %v288_v2 }
  0x1b   :  { %53 = vperm.xlu1 %213, %v31_v7  }
  0x1f   :  { %214 = vset.pattern.permute.xlu1 %v289_v4 }
  0x20   :  { %73 = vperm.xlu1 %214, %v31_v7  }
  0x24   :  { %216 = vset.pattern.permute.xlu1 %v290_v5 }
  0x25   :  { %117 = vperm.xlu1 %216, %v31_v7  }
  0x29   :  { %217 = vset.pattern.permute.xlu1 %v288_v2 }
  0x2a   :  { %142 = vperm.xlu1 %217, %v33_v8  }
  0x7d   :  { %v85_v12 = vpop.permute.xlu1 %84  ;;  %v41_v13 = vpop.permute.xlu0 %40 }
  0x7e   :  { %v43_v24 = vsub.f32 %v37_v18, %v41_v13  ;;  %v87_v28 = vsub.f32 %v82_v22, %v85_v12 }
  0x80   :  { %v44_v30 = vmul.f32 %v43_v24, %v43_v24  ;;  %v88_v32 = vmul.f32 %v87_v28, %v87_v28 }
  0x82   :  { %v48_v19 = vpop.permute.xlu1 %47  ;;  %v63_v20 = vpop.permute.xlu0 %62 }
  0x83   :  { %v65_v23 = vsub.f32 %v60_v17, %v63_v20  ;;  %v50_v35 = vmul.f32 %v48_v19, %v44_v30 }
  0x85   :  { %v66_v29 = vmul.f32 %v65_v23, %v65_v23 }
  0x87   :  { %v69_v26 = vpop.permute.xlu1 %68  ;;  %v107_v27 = vpop.permute.xlu0 %106 }
  0x88   :  { %v109_v31 = vsub.f32 %v104_v25, %v107_v27  ;;  %v71_v33 = vmul.f32 %v69_v26, %v66_v29 }
  0x8a   :  { %v110_v37 = vmul.f32 %v109_v31, %v109_v31  ;;  %v77_v38 = vadd.f32 %v71_v33, %v50_v35 }
  0x8c   :  { %v91_v34 = vpop.permute.xlu1 %90  ;;  %v126_v42 = vpop.permute.xlu0 %125 }
  0x8d   :  { %v93_v36 = vmul.f32 %v91_v34, %v88_v32 }
  0x8f   :  { %v99_v40 = vadd.f32 %v93_v36, %v77_v38 }
  0x91   :  { %v113_v39 = vpop.permute.xlu1 %112 }
  0x92   :  { %v115_v41 = vmul.f32 %v113_v39, %v110_v37 }
  0x94   :  { %v121_v43 = vadd.f32 %v115_v41, %v99_v40 }
  0x96   :  { %v128_v44 = vsub.f32 %v126_v42, %v121_v43 }
  0x98   :  { %v129_v45 = vmul.f32 1.442695, %v128_v44 }
  0x9a   :  { %219 = vpow2.f32 %v129_v45 }
  0xa7   :  { %v220_v46 = vpop.eup %219 }
  0xa8   :  { %153 = vst [vmem:[#allocation2] sm:$0xff] %v220_v46  ;;  %v131_v47 = vrot.slane %v220_v46, 4 }
  0xa9   :  { %234 = shalt.err (!%p231_p4)
}
  0xaa   :  { %165 = dma.vmem_to_hbm [thread:$0]  %s163_s5, 128, %s372_s6, [#allocation3]   ;;  %v132_v48 = vadd.f32 %v220_v46, %v131_v47  ;;  %v54_v49 = vpop.permute.xlu1 %53  ;;  %v96_v58 = vpop.permute.xlu0 %95 }
  0xab   :  { %v56_v55 = vmul.f32 %v54_v49, %v37_v18  ;;  %v98_v60 = vmul.f32 %v96_v58, %v82_v22  ;;  %s292_s6 = smov [#allocation4]  }
  0xac   :  { %v133_v50 = vrot.slane %v132_v48, 2  ;;  %s172_s16 = sshll.u32 %s292_s6, 4  ;;  %s173_s16 = int_to_ptr.vmem [resolvable:$true] %s172_s16 }
  0xad   :  { %s243_s17 = scalar_lea.vmem %s173_s16, 128  ;;  %p248_p6 = scmp.lt.s32.totalorder %s173_s16, %s173_s16 }
  0xae   :  { %v134_v51 = vadd.f32 %v133_v50, %v132_v48  ;;  %v74_v53 = vpop.permute.xlu1 %73  ;;  %p244_p5 = scmp.ne.s32.totalorder %s173_s16, %s243_s17  ;;  %p249_p7 = scmp.lt.s32.totalorder %s243_s17, %s243_s17 }
  0xaf   :  { %v76_v56 = vmul.f32 %v74_v53, %v60_v17 }
  0xb0   :  { %v135_v52 = vrot.slane %v134_v51, 1  ;;  %p250_p8 = por %p249_p7, %p248_p6 }
  0xb1   :  { %v78_v59 = vadd.f32 %v76_v56, %v56_v55 }
  0xb2   :  { %v136_v54 = vadd.f32 %v135_v52, %v134_v51  ;;  %v118_v61 = vpop.permute.xlu1 %117  ;;  %p251_p9 = pnand %p250_p8, %p244_p5 }
  0xb3   :  { %v100_v62 = vadd.f32 %v98_v60, %v78_v59  ;;  %v120_v63 = vmul.f32 %v118_v61, %v104_v25 }
  0xb4   :  { %v137_v57 = vadd.f32 1e-08, %v136_v54 }
  0xb5   :  { %v122_v0 = vadd.f32 %v120_v63, %v100_v62 }
  0xb6   :  { %221 = vrcp.f32 %v137_v57  ;;  %v143_v1 = vpop.permute.xlu1 %142 }
  0xb7   :  { %v145_v4 = vadd.f32 %v143_v1, %v122_v0 }
  0xc3   :  { %v222_v2 = vpop.eup %221 }
  0xc4   :  { %v139_v3 = vmul.f32 %v222_v2, %v220_v46 }
  0xc6   :  { %v146_v5 = vmul.f32 %v145_v4, %v139_v3  ;;  %154 = vst [vmem:[#allocation4] sm:$0xff] %v139_v3 }
  0xc7   :  { %254 = shalt.err (!%p251_p9)
}
  0xc8   :  { %175 = dma.vmem_to_hbm [thread:$0]  %s173_s16, 128, %s373_s7, [#allocation5]   ;;  %v147_v6 = vrot.slane %v146_v5, 4 }
  0xc9   :  { %s293_s20 = smov [#allocation6]  }
  0xca   :  { %v148_v7 = vadd.f32 %v147_v6, %v146_v5  ;;  %s182_s21 = sshll.u32 %s293_s20, 4  ;;  %s183_s21 = int_to_ptr.vmem [resolvable:$true] %s182_s21 }
  0xcb   :  { %s263_s22 = scalar_lea.vmem %s183_s21, 16  ;;  %s267_s23 = scalar_lea.vmem %s183_s21, 32 }
  0xcc   :  { %v149_v8 = vrot.slane %v148_v7, 2  ;;  %p264_p10 = scmp.ne.s32.totalorder %s183_s21, %s263_s22  ;;  %p268_p11 = scmp.lt.s32.totalorder %s183_s21, %s183_s21 }
  0xcd   :  { %p269_p12 = scmp.lt.s32.totalorder %s267_s23, %s263_s22 }
  0xce   :  { %v150_v9 = vadd.f32 %v149_v8, %v148_v7 }
  0xcf   :  { %p270_p13 = por %p269_p12, %p268_p11 }
  0xd0   :  { %v151_v10 = vrot.slane %v150_v9, 1 }
  0xd1   :  { %p271_p0 = pnand %p270_p13, %p264_p10 }
  0xd2   :  { %v152_v11 = vadd.f32 %v151_v10, %v150_v9 }
  0xd4   :  { %155 = vst [vmem:[#allocation6] sm:$0x1] %v152_v11 }
  0xd5   :  { %274 = shalt.err (!%p271_p0)
}
  0xd6   :  { %185 = dma.vmem_to_hbm [thread:$0]  %s183_s21, 16, %s374_s8, [#allocation5]  }
  0xd7   :  { %283 = dma.done.wait [#allocation3], 128  }
  0xd8   :  { %284 = vsyncadd [#allocation3], 4294967168 }
  0xd9   :  { %285 = dma.done.wait [#allocation5], 144  }
  0xda   :  { %286 = vsyncadd [#allocation5], 4294967152 }
  0xdb   :  { %195 = vsyncpa [#allocation3], 1 }
  0xdc   :  { %196 = vsyncpa [#allocation5], 1 }

</bundles_post_ra>
